<compile_context>
chip_gen: v7x
topology: tpu7x:2x2x1
jax: 0.10.0
libtpu: 0.0.40
codegen_flags: <defaults>
</compile_context>

<pallas_src>
import functools

import jax
import jax.numpy as jnp
from jax import lax
from jax.experimental import pallas as pl
from jax.experimental.pallas import tpu as pltpu

_LANE = 128
_SUBLANE = 8


# ---------------- helpers ----------------

def _device_kind():
    try:
        return jax.devices()[0].device_kind.lower()
    except Exception:
        return ""


def _max_block_rows(n_streams):
    """Largest power-of-two row count such that n_streams double-buffered
    (rows, 128) f32 blocks stay under the per-generation scoped-VMEM default
    (16 MiB on v5e-and-older, 32 MiB on v6e/v7x)."""
    kind = _device_kind()
    small_vmem = any(v in kind for v in ("v2", "v3", "v4", "v5"))
    budget = (12 if small_vmem else 26) * 1024 * 1024
    per_block = max(1, budget // (2 * n_streams))      # double-buffered pipeline
    rows = max(_SUBLANE, per_block // (_LANE * 4))     # size for f32, conservative
    r = _SUBLANE
    while r * 2 <= min(rows, 8192):
        r *= 2
    return r


def _n_split():
    """Leading partial-sum axis: 2 only on chips with two TensorCores behind one
    Pallas device (megacore sharding of 'parallel' grid axes)."""
    # TODO(synk): try pltpu.CORE_PARALLEL / pl.core_map on v7x for guaranteed
    # cross-core sharding instead of relying on 'parallel' semantics.
    kind = _device_kind()
    return 2 if ("v7" in kind or "v4" in kind) else 1


def _sublane_granularity(*dtypes):
    """Row granularity so every input's (rows,128) view is full native tiles."""
    min_isize = min(jnp.dtype(d).itemsize for d in dtypes)
    return _SUBLANE * max(1, 4 // max(1, min_isize))   # 8 f32, 16 bf16, 32 int8/fp8


def _prep(x, row_granularity):
    """Flatten row-major and view as (rows, 128) with rows a multiple of
    row_granularity.  Only zero-pads when numel is not already aligned (rare for
    NCHW image tensors); otherwise this is a free reshape (no HBM copy)."""
    flat = x.reshape(-1)
    n = flat.shape[0]
    tile = row_granularity * _LANE
    if n % tile != 0:
        flat = jnp.pad(flat, (0, tile - n % tile))
    return flat.reshape(-1, _LANE), n


def _fold_to_sublane(x):
    """Tree-fold an (r, 128) f32 value down to (8, 128) with log-depth VPU adds
    (r is a multiple of 8).  Static, tile-aligned slices: pure vreg adds."""
    r = x.shape[0]
    carry = None
    while r > _SUBLANE:
        half = ((r // 2) // _SUBLANE) * _SUBLANE
        y = x[:half, :] + x[half:2 * half, :]
        if r - 2 * half:                         # leftover is exactly 8 rows
            t = x[2 * half:r, :]
            carry = t if carry is None else carry + t
        x, r = y, half
    return x if carry is None else x + carry


# ---------------- kernels ----------------

def _l1_sum_kernel(p_ref, t_ref, o_ref, acc_ref, *, rows, block_rows, kb,
                   need_mask):
    i = pl.program_id(0)
    k = pl.program_id(1)

    @pl.when(k == 0)
    def _():
        acc_ref[...] = jnp.zeros_like(acc_ref)

    d = jnp.abs(p_ref[...].astype(jnp.float32) - t_ref[...].astype(jnp.float32))

    if need_mask:
        b = i * kb + k                       # unclamped logical block id
        full_blocks = rows // block_rows     # blocks fully in range
        is_edge = b >= full_blocks

        @pl.when(jnp.logical_not(is_edge))
        def _():
            acc_ref[...] += _fold_to_sublane(d)

        @pl.when(is_edge)
        def _():
            row_ids = b * block_rows + lax.broadcasted_iota(
                jnp.int32, (block_rows, _LANE), 0)
            acc_ref[...] += _fold_to_sublane(jnp.where(row_ids < rows, d, 0.0))
    else:
        acc_ref[...] += _fold_to_sublane(d)

    @pl.when(k == pl.num_programs(1) - 1)
    def _():
        o_ref[...] = acc_ref[...]


def _l1_wsum_kernel(p_ref, t_ref, w_ref, o_ref, ws_ref, acc_ref, wacc_ref, *,
                    rows, block_rows, kb, need_mask):
    i = pl.program_id(0)
    k = pl.program_id(1)

    @pl.when(k == 0)
    def _():
        acc_ref[...] = jnp.zeros_like(acc_ref)
        wacc_ref[...] = jnp.zeros_like(wacc_ref)

    w = w_ref[...].astype(jnp.float32)
    d = jnp.abs(p_ref[...].astype(jnp.float32) - t_ref[...].astype(jnp.float32))

    def accumulate(dv, wv):
        acc_ref[...] += _fold_to_sublane(dv * wv)
        wacc_ref[...] += _fold_to_sublane(wv)

    if need_mask:
        b = i * kb + k
        full_blocks = rows // block_rows
        is_edge = b >= full_blocks

        @pl.when(jnp.logical_not(is_edge))
        def _():
            accumulate(d, w)

        @pl.when(is_edge)
        def _():
            row_ids = b * block_rows + lax.broadcasted_iota(
                jnp.int32, (block_rows, _LANE), 0)
            keep = row_ids < rows
            # Mask BEFORE multiplying: OOB padding may be non-finite.
            accumulate(jnp.where(keep, d, 0.0), jnp.where(keep, w, 0.0))
    else:
        accumulate(d, w)

    @pl.when(k == pl.num_programs(1) - 1)
    def _():
        o_ref[...] = acc_ref[...]
        ws_ref[...] = wacc_ref[...]


def _l1_none_kernel(p_ref, t_ref, o_ref):
    o_ref[...] = jnp.abs(p_ref[...] - t_ref[...])


def _l1_wnone_kernel(p_ref, t_ref, w_ref, o_ref):
    o_ref[...] = jnp.abs(p_ref[...] - t_ref[...]) * w_ref[...]


# ---------------- glue ----------------

def _pallas_l1_sum(pred, target, weight=None):
    dtypes = [pred.dtype, target.dtype] + ([] if weight is None else [weight.dtype])
    gran = _sublane_granularity(*dtypes)
    p2, n = _prep(pred, gran)
    t2, _ = _prep(target, gran)
    rows = p2.shape[0]

    n_streams = 2 if weight is None else 3
    block_rows = min(_max_block_rows(n_streams), rows)
    n_split = _n_split()
    nb = pl.cdiv(rows, block_rows)          # logical blocks over the data
    kb = pl.cdiv(nb, n_split)               # blocks per parallel slice
    need_mask = (n_split * kb * block_rows) != rows
    isize = jnp.dtype(pred.dtype).itemsize

    def data_map(i, k):
        # Clamp out-of-range logical blocks; their contribution is zeroed in-kernel.
        return (jnp.minimum(i * kb + k, nb - 1), 0)

    data_spec = pl.BlockSpec((block_rows, _LANE), data_map)
    part_spec = pl.BlockSpec((_SUBLANE, _LANE), lambda i, k: (i, 0))
    part_shape = jax.ShapeDtypeStruct((n_split * _SUBLANE, _LANE), jnp.float32)
    params = pltpu.CompilerParams(dimension_semantics=("parallel", "arbitrary"))

    if weight is None:
        kern = functools.partial(_l1_sum_kernel, rows=rows,
                                 block_rows=block_rows, kb=kb,
                                 need_mask=need_mask)
        part = pl.pallas_call(
            kern,
            out_shape=part_shape,
            grid=(n_split, kb),
            in_specs=[data_spec, data_spec],
            out_specs=part_spec,
            scratch_shapes=[pltpu.VMEM((_SUBLANE, _LANE), jnp.float32)],
            compiler_params=params,
            cost_estimate=pl.CostEstimate(flops=3 * n, transcendentals=0,
                                          bytes_accessed=2 * n * isize),
        )(p2, t2)
        return jnp.sum(part), None

    w2, _ = _prep(weight, gran)
    kern = functools.partial(_l1_wsum_kernel, rows=rows, block_rows=block_rows,
                             kb=kb, need_mask=need_mask)
    part, wpart = pl.pallas_call(
        kern,
        out_shape=(part_shape, part_shape),
        grid=(n_split, kb),
        in_specs=[data_spec, data_spec, data_spec],
        out_specs=(part_spec, part_spec),
        scratch_shapes=[pltpu.VMEM((_SUBLANE, _LANE), jnp.float32),
                        pltpu.VMEM((_SUBLANE, _LANE), jnp.float32)],
        compiler_params=params,
        cost_estimate=pl.CostEstimate(flops=5 * n, transcendentals=0,
                                      bytes_accessed=3 * n * isize),
    )(p2, t2, w2)
    return jnp.sum(part), jnp.sum(wpart)


def _pallas_l1_none(pred, target, weight=None):
    shape, dtype = pred.shape, pred.dtype
    if weight is not None:
        weight = weight.astype(dtype)
    gran = _sublane_granularity(dtype)
    p2, n = _prep(pred, gran)
    t2, _ = _prep(target, gran)
    rows = p2.shape[0]
    n_streams = 3 if weight is None else 4
    block_rows = min(_max_block_rows(n_streams), rows)
    nb = pl.cdiv(rows, block_rows)
    spec = pl.BlockSpec((block_rows, _LANE), lambda i: (i, 0))
    params = pltpu.CompilerParams(dimension_semantics=("parallel",))
    isize = jnp.dtype(dtype).itemsize

    if weight is None:
        out = pl.pallas_call(
            _l1_none_kernel,
            out_shape=jax.ShapeDtypeStruct(p2.shape, dtype),
            grid=(nb,),
            in_specs=[spec, spec],
            out_specs=spec,
            compiler_params=params,
            cost_estimate=pl.CostEstimate(flops=2 * n, transcendentals=0,
                                          bytes_accessed=3 * n * isize),
        )(p2, t2)
    else:
        w2, _ = _prep(weight, gran)
        out = pl.pallas_call(
            _l1_wnone_kernel,
            out_shape=jax.ShapeDtypeStruct(p2.shape, dtype),
            grid=(nb,),
            in_specs=[spec, spec, spec],
            out_specs=spec,
            compiler_params=params,
            cost_estimate=pl.CostEstimate(flops=3 * n, transcendentals=0,
                                          bytes_accessed=4 * n * isize),
        )(p2, t2, w2)

    flat = out.reshape(-1)
    if flat.shape[0] != n:
        flat = flat[:n]
    return flat.reshape(shape)


class L1Loss:
    """L1 (MAE) loss matching basicsr.losses.basic_loss.L1Loss forward semantics."""

    def __init__(self, loss_weight=1.0, reduction='mean'):
        if reduction not in ['none', 'mean', 'sum']:
            raise ValueError(f'Unsupported reduction mode: {reduction}. '
                             f"Supported ones are: ['none', 'mean', 'sum']")
        self.loss_weight = loss_weight
        self.reduction = reduction

    def __call__(self, pred, target, weight=None, **kwargs):
        if weight is not None and weight.shape != pred.shape:
            # basicsr allows weight with C==1; broadcast element-wise.
            # TODO(synk): replicate C==1 weights via the BlockSpec index_map
            # (reuse the H*W weight plane per channel) instead of materializing a
            # pred-sized weight tensor in HBM.
            weight = jnp.broadcast_to(weight, pred.shape)

        if self.reduction == 'none':
            loss = _pallas_l1_none(pred, target, weight)
            return (self.loss_weight * loss).astype(pred.dtype)

        loss_sum, w_sum = _pallas_l1_sum(pred, target, weight)

        if self.reduction == 'sum':
            loss = loss_sum
        else:  # 'mean'
            if weight is None:
                loss = loss_sum / pred.size
            else:
                # basicsr weight_reduce_loss: divide by weight.sum() (NaN if the
                # weights sum to zero — matches the reference).
                loss = loss_sum / w_sum

        return (self.loss_weight * loss).astype(pred.dtype)


if __name__ == "__main__":
    key = jax.random.PRNGKey(0)
    k1, k2, k3 = jax.random.split(key, 3)
    pred = jax.random.normal(k1, (2, 4, 16, 16), dtype=jnp.float32)
    target = jax.random.normal(k2, (2, 4, 16, 16), dtype=jnp.float32)
    weight = jax.random.uniform(k3, (2, 4, 16, 16), dtype=jnp.float32)

    # reduction='mean' (default), no weight
    out_mean = L1Loss(loss_weight=1.0, reduction='mean')(pred, target)
    jax.block_until_ready(out_mean)
    ref_mean = jnp.mean(jnp.abs(pred - target))
    assert jnp.allclose(out_mean, ref_mean, atol=1e-6), (out_mean, ref_mean)

    # reduction='sum'
    out_sum = L1Loss(reduction='sum')(pred, target)
    jax.block_until_ready(out_sum)
    assert jnp.allclose(out_sum, jnp.sum(jnp.abs(pred - target)), atol=1e-4)

    # reduction='none' with element-wise weight
    out_none = L1Loss(reduction='none')(pred, target, weight=weight)
    jax.block_until_ready(out_none)
    assert out_none.shape == pred.shape
    assert jnp.allclose(out_none, jnp.abs(pred - target) * weight, atol=1e-6)

    # weighted mean (basicsr semantics: divide by weight.sum())
    out_wmean = L1Loss(reduction='mean')(pred, target, weight=weight)
    jax.block_until_ready(out_wmean)
    ref_wmean = jnp.sum(jnp.abs(pred - target) * weight) / jnp.sum(weight)
    assert jnp.allclose(out_wmean, ref_wmean, atol=1e-5)

    print("KERNEL_OK")
</pallas_src>

<mosaic_0001>
module attributes {stable_mosaic.version = 11 : i64} {
  func.func @_l1_sum_kernel(%arg0: i32, %arg1: i32, %arg2: memref<16x128xf32, #tpu.memory_space<vmem>>, %arg3: memref<16x128xf32, #tpu.memory_space<vmem>>, %arg4: memref<8x128xf32, #tpu.memory_space<vmem>>, %arg5: memref<8x128xf32, #tpu.memory_space<vmem>>) attributes {dimension_semantics = [#tpu.dimension_semantics<parallel>, #tpu.dimension_semantics<arbitrary>], iteration_bounds = array<i64: 1, 1>, scalar_prefetch = 0 : i64, scratch_operands = 1 : i64, tpu.core_type = #tpu.core_type<tc>, window_params = [{transform_indices = @transform_0, window_bounds = array<i64: 16, 128>}, {transform_indices = @transform_1, window_bounds = array<i64: 16, 128>}, {transform_indices = @transform_2, window_bounds = array<i64: 8, 128>}]} {
    %c0_i32 = arith.constant 0 : i32
    %0 = arith.cmpi eq, %arg1, %c0_i32 : i32
    %1 = arith.extui %0 : i1 to i32
    %c0_i32_0 = arith.constant 0 : i32
    %2 = arith.cmpi ne, %1, %c0_i32_0 : i32
    scf.if %2 {
      %cst = arith.constant 0.000000e+00 : f32
      %16 = vector.broadcast %cst : f32 to vector<8x128xf32>
      %c0_10 = arith.constant 0 : index
      %c0_11 = arith.constant 0 : index
      %17 = vector.load %arg5[%c0_10, %c0_11] : memref<8x128xf32, #tpu.memory_space<vmem>>, vector<8x128xf32>
      tpu.vector_store %arg5[%c0_10, %c0_11], %16 {strides = array<i32>} : memref<8x128xf32, #tpu.memory_space<vmem>>, vector<8x128xf32>,
    } else {
    }
    %c0 = arith.constant 0 : index
    %c0_1 = arith.constant 0 : index
    %3 = vector.load %arg2[%c0, %c0_1] : memref<16x128xf32, #tpu.memory_space<vmem>>, vector<16x128xf32>
    %c0_2 = arith.constant 0 : index
    %c0_3 = arith.constant 0 : index
    %4 = vector.load %arg3[%c0_2, %c0_3] : memref<16x128xf32, #tpu.memory_space<vmem>>, vector<16x128xf32>
    %5 = arith.subf %3, %4 : vector<16x128xf32>
    %6 = math.absf %5 : vector<16x128xf32>
    %c0_4 = arith.constant 0 : index
    %c0_5 = arith.constant 0 : index
    %7 = vector.load %arg5[%c0_4, %c0_5] : memref<8x128xf32, #tpu.memory_space<vmem>>, vector<8x128xf32>
    %8 = vector.extract_strided_slice %6 {offsets = [0, 0], sizes = [8, 128], strides = [1, 1]} : vector<16x128xf32> to vector<8x128xf32>
    %9 = vector.extract_strided_slice %6 {offsets = [8, 0], sizes = [8, 128], strides = [1, 1]} : vector<16x128xf32> to vector<8x128xf32>
    %10 = arith.addf %8, %9 : vector<8x128xf32>
    %11 = arith.addf %7, %10 : vector<8x128xf32>
    %c0_6 = arith.constant 0 : index
    %c0_7 = arith.constant 0 : index
    %12 = vector.load %arg5[%c0_6, %c0_7] : memref<8x128xf32, #tpu.memory_space<vmem>>, vector<8x128xf32>
    tpu.vector_store %arg5[%c0_6, %c0_7], %11 {strides = array<i32>} : memref<8x128xf32, #tpu.memory_space<vmem>>, vector<8x128xf32>,
    %c0_i32_8 = arith.constant 0 : i32
    %13 = arith.cmpi eq, %arg1, %c0_i32_8 : i32
    %14 = arith.extui %13 : i1 to i32
    %c0_i32_9 = arith.constant 0 : i32
    %15 = arith.cmpi ne, %14, %c0_i32_9 : i32
    scf.if %15 {
      %c0_10 = arith.constant 0 : index
      %c0_11 = arith.constant 0 : index
      %16 = vector.load %arg5[%c0_10, %c0_11] : memref<8x128xf32, #tpu.memory_space<vmem>>, vector<8x128xf32>
      %c0_12 = arith.constant 0 : index
      %c0_13 = arith.constant 0 : index
      %17 = vector.load %arg4[%c0_12, %c0_13] : memref<8x128xf32, #tpu.memory_space<vmem>>, vector<8x128xf32>
      tpu.vector_store %arg4[%c0_12, %c0_13], %16 {strides = array<i32>} : memref<8x128xf32, #tpu.memory_space<vmem>>, vector<8x128xf32>,
    } else {
    }
    return
  }
  func.func @transform_0(%arg0: i32, %arg1: i32) -> (i32, i32) {
    %c1_i32 = arith.constant 1 : i32
    %0 = arith.muli %arg0, %c1_i32 : i32
    %1 = arith.addi %0, %arg1 : i32
    %c0_i32 = arith.constant 0 : i32
    %2 = arith.minsi %1, %c0_i32 : i32
    %c0_i32_0 = arith.constant 0 : i32
    %c0_i32_1 = arith.constant 0 : i32
    return %2, %c0_i32_0 : i32, i32
  }
  func.func @transform_1(%arg0: i32, %arg1: i32) -> (i32, i32) {
    %c1_i32 = arith.constant 1 : i32
    %0 = arith.muli %arg0, %c1_i32 : i32
    %1 = arith.addi %0, %arg1 : i32
    %c0_i32 = arith.constant 0 : i32
    %2 = arith.minsi %1, %c0_i32 : i32
    %c0_i32_0 = arith.constant 0 : i32
    %c0_i32_1 = arith.constant 0 : i32
    return %2, %c0_i32_0 : i32, i32
  }
  func.func @transform_2(%arg0: i32, %arg1: i32) -> (i32, i32) {
    %c0_i32 = arith.constant 0 : i32
    %c0_i32_0 = arith.constant 0 : i32
    return %arg0, %c0_i32 : i32, i32
  }
}

</mosaic_0001>

<bundles_post_ra>
// kernel: tpu_custom_call.1
= control target key start
LH: loop header
LB: loop body
LE: loop exit
PB: predicated region body
PF: predicated region fallthrough
CT: control target
= control target key end

     0   :  { %7 = vsyncpa [#allocation4], 0  ;;  %s235_s0 = inlined_call_operand.hbm [shape: f32[16,128], index: 0, kind: input, shape index: {}]   ;;  %s236_s1 = inlined_call_operand.hbm [shape: f32[16,128], index: 1, kind: input, shape index: {}]   ;;  %s237_s2 = inlined_call_operand.hbm [shape: f32[8,128], index: 2, kind: output, shape index: {}]  }
   0x1   :  { %8 = vsyncpa [#allocation7], 0 }
   0x2   :  { %9 = vsyncpa [#allocation5], 0  ;;  %s179_s9 = smov [#allocation3]   ;;  %s107_s13 = scalar_lea.hbm %s235_s0, 256 }
   0x3   :  { %s21_s10 = sshll.u32 %s179_s9, 4  ;;  %p108_p0 = scmp.ne.s32.totalorder %s235_s0, %s107_s13  ;;  %s22_s10 = int_to_ptr.vmem [resolvable:$true] %s21_s10 }
   0x4   :  { %p111_p1 = scmp.lt.u32.totalorder %s107_s13, %s235_s0 }
   0x6   :  { %p113_p2 = pnand %p111_p1, %p108_p0 }
   0x8   :  { %116 = shalt.err (!%p113_p2)
}
   0x9   :  { %s117_s18 = scalar_lea.vmem %s22_s10, 256  ;;  %p122_p4 = scmp.lt.s32.totalorder %s22_s10, %s22_s10 }
   0xa   :  { %p118_p3 = scmp.ne.s32.totalorder %s22_s10, %s117_s18  ;;  %p123_p5 = scmp.lt.s32.totalorder %s117_s18, %s117_s18 }
   0xc   :  { %p124_p6 = por %p123_p5, %p122_p4 }
   0xe   :  { %p125_p7 = pnand %p124_p6, %p118_p3 }
  0x10   :  { %128 = shalt.err (!%p125_p7)
}
  0x11   :  { %s180_s19 = smov 128   ;;  %s181_s20 = smov 8  }
  0x12   :  { %27 = dma.hbm_to_vmem [thread:$0]  %s235_s0, 256, %s22_s10, [#allocation4], %s180_s19, %s180_s19, %s181_s20  }
  0x13   :  { %s182_s23 = smov [#allocation6]   ;;  %s129_s27 = scalar_lea.hbm %s236_s1, 256 }
  0x14   :  { %s39_s24 = sshll.u32 %s182_s23, 4  ;;  %p130_p8 = scmp.ne.s32.totalorder %s236_s1, %s129_s27  ;;  %s40_s24 = int_to_ptr.vmem [resolvable:$true] %s39_s24 }
  0x15   :  { %p133_p9 = scmp.lt.u32.totalorder %s129_s27, %s236_s1 }
  0x17   :  { %p135_p10 = pnand %p133_p9, %p130_p8 }
  0x19   :  { %138 = shalt.err (!%p135_p10)
}
  0x1a   :  { %s139_s4 = scalar_lea.vmem %s40_s24, 256  ;;  %p144_p12 = scmp.lt.s32.totalorder %s40_s24, %s40_s24 }
  0x1b   :  { %p140_p11 = scmp.ne.s32.totalorder %s40_s24, %s139_s4  ;;  %p145_p13 = scmp.lt.s32.totalorder %s139_s4, %s139_s4 }
  0x1d   :  { %p146_p0 = por %p145_p13, %p144_p12 }
  0x1f   :  { %p147_p1 = pnand %p146_p0, %p140_p11 }
  0x21   :  { %150 = shalt.err (!%p147_p1)
}
  0x22   :  { %45 = dma.hbm_to_vmem [thread:$0]  %s236_s1, 256, %s40_s24, [#allocation7], %s180_s19, %s180_s19, %s181_s20  }
  0x23   :  { %173 = dma.done.wait [#allocation4], 256  }
  0x24   :  { %174 = vsyncadd [#allocation4], 4294967040 }
  0x25   :  { %175 = dma.done.wait [#allocation7], 256  }
  0x26   :  { %176 = vsyncadd [#allocation7], 4294967040  ;;  %v65_v0 = vld [vmem:[#allocation3] sm:$0xff]  ;;  %v66_v1 = vld [vmem:[#allocation3 + $0x8] sm:$0xff]  ;;  %s183_s6 = smov [#allocation8]  }
  0x27   :  { %v67_v2 = vld [vmem:[#allocation6] sm:$0xff]  ;;  %v68_v3 = vld [vmem:[#allocation6 + $0x8] sm:$0xff]  ;;  %s88_s7 = sshll.u32 %s183_s6, 4  ;;  %s89_s7 = int_to_ptr.vmem [resolvable:$true] %s88_s7 }
  0x28   :  { %v69_v4 = vsub.f32 %v65_v0, %v67_v2  ;;  %v70_v5 = vsub.f32 %v66_v1, %v68_v3  ;;  %s151_s8 = scalar_lea.vmem %s89_s7, 128  ;;  %p156_p3 = scmp.lt.s32.totalorder %s89_s7, %s89_s7 }
  0x29   :  { %p152_p2 = scmp.ne.s32.totalorder %s89_s7, %s151_s8  ;;  %p157_p4 = scmp.lt.s32.totalorder %s151_s8, %s151_s8 }
  0x2a   :  { %v71_v6 = vand.u32 2147483647, %v69_v4  ;;  %v72_v7 = vand.u32 2147483647, %v70_v5 }
  0x2b   :  { %p158_p5 = por %p157_p4, %p156_p3 }
  0x2c   :  { %v74_v8 = vadd.f32 %v72_v7, %v71_v6 }
  0x2d   :  { %p159_p6 = pnand %p158_p5, %p152_p2 }
  0x2e   :  { %81 = vst [vmem:[#allocation8] sm:$0xff] %v74_v8 }
  0x2f   :  { %162 = shalt.err (!%p159_p6)
}
  0x30   :  { %s163_s10 = scalar_lea.hbm %s237_s2, 128 }
  0x31   :  { %p164_p7 = scmp.ne.s32.totalorder %s237_s2, %s163_s10  ;;  %p167_p8 = scmp.lt.u32.totalorder %s163_s10, %s237_s2 }
  0x33   :  { %p169_p9 = pnand %p167_p8, %p164_p7 }
  0x35   :  { %172 = shalt.err (!%p169_p9)
}
  0x36   :  { %91 = dma.vmem_to_hbm [thread:$0]  %s89_s7, 128, %s237_s2, [#allocation5]  }
  0x37   :  { %177 = dma.done.wait [#allocation5], 128  }
  0x38   :  { %178 = vsyncadd [#allocation5], 4294967168 }
  0x39   :  { %95 = vsyncpa [#allocation4], 1 }
  0x3a   :  { %96 = vsyncpa [#allocation7], 1 }
  0x3b   :  { %97 = vsyncpa [#allocation5], 1 }

</bundles_post_ra>
